<compile_context>
chip_gen: v7x
topology: tpu7x:2x2x1
jax: 0.10.0
libtpu: 0.0.40
codegen_flags: <defaults>
</compile_context>

<pallas_src>
import jax
import jax.numpy as jnp
from jax.experimental import pallas as pl
from jax.experimental.pallas import tpu as pltpu

N_CIRCLES = 10
N_ANGLES = 18                      # k in range(0, 360, 20)
P_TOTAL = N_CIRCLES * N_ANGLES     # 180 generated points per batch element
_BIG = 1e30                        # ||t||^2 for padded target columns (never wins)
_LANE = 128                        # lane chunk folded into the accumulator per MXU call


# ---------------------------------------------------------------------------
# Glue: generate the 180 circle points per batch element (vectorized, exact
# reproduction of the nested python loops + Rotate_Point3d of the torch code).
# ---------------------------------------------------------------------------
def _generate_circle_points(pred):
    """pred: (B, 70) float32 -> points (B, 180, 3) float32."""
    B = pred.shape[0]
    pred_ = pred.reshape(B, 10, 7)
    center = pred_[:, :, 0:3]                     # (B,10,3)
    normal = pred_[:, :, 3:6]                     # (B,10,3)
    radis = pred_[:, :, 6]                        # (B,10)

    n = normal / jnp.linalg.norm(normal, axis=-1, keepdims=True)
    u, v, w = n[..., 0], n[..., 1], n[..., 2]     # (B,10)

    cz = jnp.stack([-v, u, jnp.zeros_like(u)], axis=-1)
    cz = cz / jnp.linalg.norm(cz, axis=-1, keepdims=True)
    first = center + radis[..., None] * cz        # (B,10,3)

    ang = jnp.arange(0, 360, 20, dtype=jnp.float32) * (2.0 * 3.1415926 / 360.0)
    c = jnp.cos(ang)[None, None, :]               # (1,1,18)
    s = jnp.sin(ang)[None, None, :]

    u = u[..., None]
    v = v[..., None]
    w = w[..., None]                              # (B,10,1)

    # Rodrigues rotation matrix entries (B,10,18)
    r00 = u * u + (1 - u * u) * c
    r01 = u * v * (1 - c) - w * s
    r02 = u * w * (1 - c) + v * s
    r10 = u * v * (1 - c) + w * s
    r11 = v * v + (1 - v * v) * c
    r12 = v * w * (1 - c) - u * s
    r20 = u * w * (1 - c) - v * s
    r21 = v * w * (1 - c) + u * s
    r22 = w * w + (1 - w * w) * c

    fx = first[..., 0:1]
    fy = first[..., 1:2]
    fz = first[..., 2:3]                          # (B,10,1)

    px = r00 * fx + r01 * fy + r02 * fz
    py = r10 * fx + r11 * fy + r12 * fz
    pz = r20 * fx + r21 * fy + r22 * fz
    pts = jnp.stack([px, py, pz], axis=-1)        # (B,10,18,3), index = j*18+k
    return pts.reshape(B, P_TOTAL, 3)


# ---------------------------------------------------------------------------
# Pallas kernel: chunked (||t||^2 - 2 p.t) matmul, elementwise min-accumulate
# into a (bt, P, 128) VMEM scratch, finalize adds ||p||^2, does the single
# cross-lane min and the sum over P -> per-batch scalar.
# ---------------------------------------------------------------------------
def _min_d2_sum_kernel(pts_ref, tgt_ref, out_ref, acc_ref):
    # pts_ref: (bt, P, 4)       = [-2x, -2y, -2z, 1]   (resident across N tiles)
    # tgt_ref: (bt, 4, n_tile)  = [x, y, z, ||t||^2]   (lane-dense N)
    # out_ref: (bt, 1, 1)       = sum_p min_n ||p - t||^2 per batch element
    # acc_ref: (bt, P, 128)     = running elementwise min of (||t||^2 - 2 p.t)
    nt = pl.program_id(1)

    @pl.when(nt == 0)
    def _init():
        acc_ref[...] = jnp.full(acc_ref.shape, jnp.inf, acc_ref.dtype)

    lhs = pts_ref[...]                                       # (bt, P, 4)
    n_chunks = tgt_ref.shape[2] // _LANE                     # static, small
    for c in range(n_chunks):                                # short static loop
        rhs = tgt_ref[:, :, c * _LANE:(c + 1) * _LANE]       # (bt, 4, 128)
        d = jnp.einsum("bpk,bkc->bpc", lhs, rhs,
                       preferred_element_type=jnp.float32)   # ||t||^2 - 2 p.t
        acc_ref[...] = jnp.minimum(acc_ref[...], d)          # pure VALU vmin

    @pl.when(nt == pl.num_programs(1) - 1)
    def _finalize():
        # ||p||^2 recomputed exactly from the (-2x,-2y,-2z) columns (scale by
        # powers of two is exact -> bitwise identical to a precomputed ||p||^2).
        xyz = lhs[:, :, 0:3]
        p2 = 0.25 * jnp.sum(xyz * xyz, axis=-1, keepdims=True)        # (bt, P, 1)
        mind2 = jnp.min(acc_ref[...], axis=-1, keepdims=True) + p2    # (bt, P, 1)
        # clamp tiny negative cancellation residue (reference chain is >= 0)
        mind2 = jnp.maximum(mind2, 0.0)
        out_ref[...] = jnp.sum(mind2, axis=1, keepdims=True)          # (bt, 1, 1)


def min_dist_sq_sum(points, target, *, n_tile_max=512):
    """points (B, P, 3), target (B, N, 3) -> (B,) of sum_p min_n ||p - t||^2.

    n_tile_max: lane-dense N tile width (multiple of 128). 512 keeps the VMEM
    footprint ~4 MB (safe even for v5e's 16 MiB default scoped VMEM / v7x's
    64 MiB per-TC); raise to 2048-4096 on v6e for very large N.
    """
    B, P, _ = points.shape
    N = target.shape[1]

    # Augmented points (channel-last, proven MXU-LHS path): [-2x, -2y, -2z, 1]
    p = points.astype(jnp.float32)
    pts_aug = jnp.concatenate([-2.0 * p, jnp.ones((B, P, 1), jnp.float32)], axis=-1)

    # Augmented target (channel-first, N lane-dense): [x, y, z, ||t||^2]
    t = jnp.swapaxes(target.astype(jnp.float32), 1, 2)                # (B,3,N)
    t2 = jnp.sum(t * t, axis=1, keepdims=True)                        # (B,1,N)
    tgt_aug = jnp.concatenate([t, t2], axis=1)                        # (B,4,N)

    # Lane-dense N tiling; pad columns get ||t||^2 = _BIG so they never win.
    n_tile = min(n_tile_max, pl.cdiv(N, _LANE) * _LANE)
    n_tile = max(_LANE, (n_tile // _LANE) * _LANE)
    N_pad = pl.cdiv(N, n_tile) * n_tile
    if N_pad != N:
        pad = jnp.zeros((B, 4, N_pad - N), jnp.float32).at[:, 3, :].set(_BIG)
        tgt_aug = jnp.concatenate([tgt_aug, pad], axis=2)

    # Batch tiling: >= 2 blocks on the "parallel" axis whenever B >= 2 (v7x has
    # two TensorCores); 8 per tile once B is large enough to amortize the
    # ~0.35 us per-grid-step overhead.
    bt = 8 if B >= 16 else max(1, B // 2)
    B_pad = pl.cdiv(B, bt) * bt
    if B_pad != B:
        pts_aug = jnp.pad(pts_aug, ((0, B_pad - B), (0, 0), (0, 0)))
        tgt_aug = jnp.pad(tgt_aug, ((0, B_pad - B), (0, 0), (0, 0)))

    out = pl.pallas_call(
        _min_d2_sum_kernel,
        out_shape=jax.ShapeDtypeStruct((B_pad, 1, 1), jnp.float32),
        grid_spec=pltpu.PrefetchScalarGridSpec(
            num_scalar_prefetch=0,
            grid=(B_pad // bt, N_pad // n_tile),
            in_specs=[
                pl.BlockSpec((bt, P, 4), lambda b, n: (b, 0, 0)),
                pl.BlockSpec((bt, 4, n_tile), lambda b, n: (b, 0, n)),
            ],
            out_specs=pl.BlockSpec((bt, 1, 1), lambda b, n: (b, 0, 0)),
            scratch_shapes=[pltpu.VMEM((bt, P, _LANE), jnp.float32)],
        ),
        compiler_params=pltpu.CompilerParams(
            dimension_semantics=("parallel", "arbitrary"),
            vmem_limit_bytes=32 * 1024 * 1024,
        ),
    )(pts_aug, tgt_aug)
    # padded batch rows compute harmless garbage and are sliced away here
    return out[:B, 0, 0]


def get_loss_forward(pred, target, trans_feat=None):
    """Equivalent of get_loss.forward(pred, target, trans_feat)."""
    del trans_feat  # accepted but unused, exactly as in the reference module
    B = pred.shape[0]
    points = _generate_circle_points(pred)            # (B, 180, 3)
    per_batch_sum = min_dist_sq_sum(points, target)   # (B,) sum over P of min d2
    return jnp.sum(per_batch_sum / P_TOTAL) / B


if __name__ == "__main__":
    key = jax.random.PRNGKey(0)
    k1, k2, k3 = jax.random.split(key, 3)
    B, N = 2, 128
    pred = jax.random.normal(k1, (B, 70), dtype=jnp.float32)            # 10 circles x 7 params
    target = jax.random.normal(k2, (B, N, 3), dtype=jnp.float32)        # target point cloud
    trans_feat = jax.random.normal(k3, (B, 16, 16), dtype=jnp.float32)  # unused by the loss

    loss = jax.jit(get_loss_forward)(pred, target, trans_feat)
    loss = jax.block_until_ready(loss)

    # pure-JAX reference that mirrors the torch sqrt -> min -> square chain
    pts = _generate_circle_points(pred)
    diff = pts[:, :, None, :] - target[:, None, :, :]
    ref_min = jnp.min(jnp.sqrt(jnp.sum(diff * diff, axis=-1)), axis=2)
    ref_loss = jnp.sum(jnp.sum(ref_min * ref_min, axis=1) / pts.shape[1]) / B
    assert jnp.allclose(loss, ref_loss, rtol=1e-3, atol=1e-5), (loss, ref_loss)

    print("KERNEL_OK")
</pallas_src>

<mosaic_0001>
module attributes {stable_mosaic.version = 11 : i64} {
  func.func @_min_d2_sum_kernel(%arg0: i32, %arg1: i32, %arg2: memref<1x180x4xf32, #tpu.memory_space<vmem>>, %arg3: memref<1x4x128xf32, #tpu.memory_space<vmem>>, %arg4: memref<1x1x1xf32, #tpu.memory_space<vmem>>, %arg5: memref<1x180x128xf32, #tpu.memory_space<vmem>>) attributes {dimension_semantics = [#tpu.dimension_semantics<parallel>, #tpu.dimension_semantics<arbitrary>], iteration_bounds = array<i64: 2, 1>, scalar_prefetch = 0 : i64, scratch_operands = 1 : i64, tpu.core_type = #tpu.core_type<tc>, window_params = [{transform_indices = @transform_0, window_bounds = array<i64: 1, 180, 4>}, {transform_indices = @transform_1, window_bounds = array<i64: 1, 4, 128>}, {transform_indices = @transform_2, window_bounds = array<i64: 1, 1, 1>}]} {
    %c0_i32 = arith.constant 0 : i32
    %0 = arith.cmpi eq, %arg1, %c0_i32 : i32
    %1 = arith.extui %0 : i1 to i32
    %c0_i32_0 = arith.constant 0 : i32
    %2 = arith.cmpi ne, %1, %c0_i32_0 : i32
    scf.if %2 {
      %cst_14 = arith.constant 0x7F800000 : f32
      %12 = vector.broadcast %cst_14 : f32 to vector<1x180x128xf32>
      %c0_15 = arith.constant 0 : index
      %c0_16 = arith.constant 0 : index
      %c0_17 = arith.constant 0 : index
      %13 = vector.load %arg5[%c0_15, %c0_16, %c0_17] : memref<1x180x128xf32, #tpu.memory_space<vmem>>, vector<1x180x128xf32>
      tpu.vector_store %arg5[%c0_15, %c0_16, %c0_17], %12 {strides = array<i32>} : memref<1x180x128xf32, #tpu.memory_space<vmem>>, vector<1x180x128xf32>,
    } else {
    }
    %c0 = arith.constant 0 : index
    %c0_1 = arith.constant 0 : index
    %c0_2 = arith.constant 0 : index
    %3 = vector.load %arg2[%c0, %c0_1, %c0_2] : memref<1x180x4xf32, #tpu.memory_space<vmem>>, vector<1x180x4xf32>
    %c0_3 = arith.constant 0 : index
    %c0_4 = arith.constant 0 : index
    %c0_5 = arith.constant 0 : index
    %4 = vector.load %arg3[%c0_3, %c0_4, %c0_5] : memref<1x4x128xf32, #tpu.memory_space<vmem>>, vector<1x4x128xf32>
    "tpu.trace_start"() <{level = 10 : i32, message = "bpk,bkc->bpc"}> : () -> ()
    %cst = arith.constant dense<0.000000e+00> : vector<1x180x128xf32>
    %5 = tpu.matmul %3, %4, %cst {dimension_numbers = #tpu.dot_dimension_numbers<[2], [1], [1], [2], [0, 0, 0, 1, 1, 2], [0], [0]>} : vector<1x180x4xf32>, vector<1x4x128xf32>, vector<1x180x128xf32> -> vector<1x180x128xf32>
    "tpu.trace_stop"() : () -> ()
    %c0_6 = arith.constant 0 : index
    %c0_7 = arith.constant 0 : index
    %c0_8 = arith.constant 0 : index
    %6 = vector.load %arg5[%c0_6, %c0_7, %c0_8] : memref<1x180x128xf32, #tpu.memory_space<vmem>>, vector<1x180x128xf32>
    %7 = arith.minimumf %6, %5 : vector<1x180x128xf32>
    %c0_9 = arith.constant 0 : index
    %c0_10 = arith.constant 0 : index
    %c0_11 = arith.constant 0 : index
    %8 = vector.load %arg5[%c0_9, %c0_10, %c0_11] : memref<1x180x128xf32, #tpu.memory_space<vmem>>, vector<1x180x128xf32>
    tpu.vector_store %arg5[%c0_9, %c0_10, %c0_11], %7 {strides = array<i32>} : memref<1x180x128xf32, #tpu.memory_space<vmem>>, vector<1x180x128xf32>,
    %c0_i32_12 = arith.constant 0 : i32
    %9 = arith.cmpi eq, %arg1, %c0_i32_12 : i32
    %10 = arith.extui %9 : i1 to i32
    %c0_i32_13 = arith.constant 0 : i32
    %11 = arith.cmpi ne, %10, %c0_i32_13 : i32
    scf.if %11 {
      %12 = vector.extract_strided_slice %3 {offsets = [0, 0, 0], sizes = [1, 180, 3], strides = [1, 1, 1]} : vector<1x180x4xf32> to vector<1x180x3xf32>
      %13 = arith.mulf %12, %12 : vector<1x180x3xf32>
      %cst_14 = arith.constant dense<0.000000e+00> : vector<1x180xf32>
      %14 = vector.multi_reduction <add>, %13, %cst_14 [2] : vector<1x180x3xf32> to vector<1x180xf32>
      %15 = vector.shape_cast %14 : vector<1x180xf32> to vector<1x180x1xf32>
      %cst_15 = arith.constant 2.500000e-01 : f32
      %16 = vector.broadcast %cst_15 : f32 to vector<1x180x1xf32>
      %17 = arith.mulf %16, %15 : vector<1x180x1xf32>
      %c0_16 = arith.constant 0 : index
      %c0_17 = arith.constant 0 : index
      %c0_18 = arith.constant 0 : index
      %18 = vector.load %arg5[%c0_16, %c0_17, %c0_18] : memref<1x180x128xf32, #tpu.memory_space<vmem>>, vector<1x180x128xf32>
      %cst_19 = arith.constant dense<0x7F800000> : vector<1x180xf32>
      %19 = vector.multi_reduction <minimumf>, %18, %cst_19 [2] : vector<1x180x128xf32> to vector<1x180xf32>
      %20 = vector.shape_cast %19 : vector<1x180xf32> to vector<1x180x1xf32>
      %21 = arith.addf %20, %17 : vector<1x180x1xf32>
      %cst_20 = arith.constant 0.000000e+00 : f32
      %22 = vector.broadcast %cst_20 : f32 to vector<1x180x1xf32>
      %23 = arith.maximumf %21, %22 : vector<1x180x1xf32>
      %cst_21 = arith.constant dense<0.000000e+00> : vector<1x1xf32>
      %24 = vector.multi_reduction <add>, %23, %cst_21 [1] : vector<1x180x1xf32> to vector<1x1xf32>
      %25 = vector.shape_cast %24 : vector<1x1xf32> to vector<1x1x1xf32>
      %c0_22 = arith.constant 0 : index
      %c0_23 = arith.constant 0 : index
      %c0_24 = arith.constant 0 : index
      %26 = vector.load %arg4[%c0_22, %c0_23, %c0_24] : memref<1x1x1xf32, #tpu.memory_space<vmem>>, vector<1x1x1xf32>
      tpu.vector_store %arg4[%c0_22, %c0_23, %c0_24], %25 {strides = array<i32>} : memref<1x1x1xf32, #tpu.memory_space<vmem>>, vector<1x1x1xf32>,
    } else {
    }
    return
  }
  func.func @transform_0(%arg0: i32, %arg1: i32) -> (i32, i32, i32) {
    %c0_i32 = arith.constant 0 : i32
    %c0_i32_0 = arith.constant 0 : i32
    %c0_i32_1 = arith.constant 0 : i32
    return %arg0, %c0_i32, %c0_i32_0 : i32, i32, i32
  }
  func.func @transform_1(%arg0: i32, %arg1: i32) -> (i32, i32, i32) {
    %c0_i32 = arith.constant 0 : i32
    %c0_i32_0 = arith.constant 0 : i32
    return %arg0, %c0_i32, %arg1 : i32, i32, i32
  }
  func.func @transform_2(%arg0: i32, %arg1: i32) -> (i32, i32, i32) {
    %c0_i32 = arith.constant 0 : i32
    %c0_i32_0 = arith.constant 0 : i32
    %c0_i32_1 = arith.constant 0 : i32
    return %arg0, %c0_i32, %c0_i32_0 : i32, i32, i32
  }
}

</mosaic_0001>

<bundles_post_ra>
// kernel: get_loss_forward.1
= control target key start
LH: loop header
LB: loop body
LE: loop exit
PB: predicated region body
PF: predicated region fallthrough
CT: control target
= control target key end

     0   :  { %s1091_s9 = smov 0   ;;  %s1093_s10 = smov 0   ;;  %s1346_s0 = inlined_call_operand.vmem [shape: f32[2,180,4], index: 0, kind: input, shape index: {}]   ;;  %s1347_s1 = inlined_call_operand.vmem [shape: f32[2,4,128], index: 1, kind: input, shape index: {}]   ;;  %s1348_s2 = inlined_call_operand.vmem [shape: f32[2,1,1], index: 2, kind: output, shape index: {}]  }
   0x1   :  { %s1095_s11 = smov 0  }
   0x2 LB: > { %s24_s12 = sadd.s32 1, %s1067_s10  ;;  %p895_p0 = scmp.ge.s32.totalorder %s1071_s11, 1  ;;  %s1071_s11 = sphi %s1095_s11, %s12_s11   ;;  %s1067_s10 = sphi %s1093_s10, %s1350_s10   ;;  %s1063_s9 = sphi %s1091_s9, %s1349_s9  }
   0x3   : > { %p26_p1 = scmp.ge.s32.totalorder %s24_s12, 2  ;;  %p138_p2 = scmp.lt.s32.totalorder %s1071_s11, 3 }
   0x5   : > { %s1352_s12 = smov (%p26_p1, %s24_s12), 0  ;;  %p139_p3 = pnand %p895_p0, %p138_p2 }
   0x6   : > { %p165_p4 = scmp.lt.s32.totalorder (!%p139_p3), %s1063_s9, 1  ;;  %v1073_v0 = vmov (!%p139_p3), 0.0   ;;  %vm1074_vm0 = vmmov (!%p139_p3), 0   ;;  %v1075_v1 = vmov (!%p139_p3), inf   ;;  %vm301_vm1 = vcmask (!%p139_p3), 1043456  }
   0x7   : > { %142 = sbr.rel (%p139_p3) target bundleno = 475 (0x1db), region = 28  ;;  %948 = vmatprep.subr.mxu0 (!%p139_p3), %v1073_v0  ;;  %1019 = vmatprep.subr.mxu1 (!%p139_p3), %v1073_v0  ;;  %206 = vst [vmem:[#allocation2 + $0xb0] sm:$0xf] (!%p139_p3), %v1075_v1  ;;  %vm231_vm2 = vcmask (!%p139_p3), 31744   ;;  %vm580_vm3 = vcmask (!%p139_p3), 23552   ;;  %vm647_vm4 = vcmask (!%p139_p3), 19456  }
   0x8   : > { %950 = vmatprep.mubr.msk.f32.mxu0 (!%p139_p3), %vm1074_vm0, %v1073_v0  ;;  %986 = vmatprep.mubr.msk.f32.mxu1 (!%p139_p3), %vm1074_vm0, %v1073_v0  ;;  %vm819_vm5 = vcmask (!%p139_p3), 0  }
   0xe   : > { %s1354_s9 = smov (!%p165_p4, %s1063_s9), 1 }
   0xf   : > { %s1021_s13 = smul.u32 184, %s1354_s9  ;;  %s897_s14 = sshll.u32 %s1354_s9, 2 }
  0x10   : > { %s176_s17 = scalar_lea.vmem %s1347_s1, %s897_s14  ;;  %s179_s23 = scalar_lea.vmem %s1348_s2, %s1354_s9 }
  0x11   : > { %s1125_s20 = scalar_lea.vmem %s1346_s0, %s1021_s13  ;;  %v230_v2 = vld [vmem:[%s176_s17] sm:$0xf] }
  0x12   : > { %949 = vmatpush3.msk.msra.mxu0 %vm301_vm1, %v230_v2  ;;  %1020 = vmatpush3.msk.msra.mxu1 %vm301_vm1, %v230_v2  ;;  %v1130_v3 = vld [vmem:[%s1125_s20] sm:$0xff]  ;;  %v209_v5 = vld [vmem:[%s1125_s20 + $0x10] sm:$0xff]  ;;  %v1143_v6 = vld [vmem:[%s1125_s20 + $0x8] sm:$0xff] }
  0x13   : > { %v1133_v4 = vld [vmem:[%s1125_s20 + $0x60] sm:$0xff]  ;;  %951 = vmatmul.mubr.msk.f32.vlgmr.msra.gmra.mrb[0].mxu0 %vm231_vm2, %v1130_v3  ;;  %v1148_v7 = vld [vmem:[%s1125_s20 + $0x68] sm:$0xff]  ;;  %v559_v8 = vmul.f32 %v209_v5, %v209_v5  ;;  %v210_v9 = vld [vmem:[%s1125_s20 + $0x18] sm:$0xff]  ;;  %v557_v45 = vmul.f32 %v1130_v3, %v1130_v3  ;;  %v558_v49 = vmul.f32 %v1143_v6, %v1143_v6 }
  0x14   : > { %987 = vmatmul.mubr.msk.f32.vlgmr.msra.gmra.mrb[0].mxu1 %vm231_vm2, %v1133_v4  ;;  %953 = vmatprep.mubr.msk.f32.mxu0 %vm1074_vm0, %v1073_v0  ;;  %v560_v11 = vmul.f32 %v210_v9, %v210_v9  ;;  %v1161_v12 = vld [vmem:[%s1125_s20 + $0x70] sm:$0xff]  ;;  %v211_v13 = vld [vmem:[%s1125_s20 + $0x20] sm:$0xff]  ;;  %v1173_v16 = vld [vmem:[%s1125_s20 + $0x78] sm:$0xff]  ;;  %v569_v48 = vmul.f32 %v1133_v4, %v1133_v4  ;;  %v570_v54 = vmul.f32 %v1148_v7, %v1148_v7 }
  0x15   : > { %989 = vmatprep.mubr.msk.f32.mxu1 %vm1074_vm0, %v1073_v0  ;;  %v587_v10 = vsel %vm580_vm3, %v559_v8, 0.0  ;;  %v561_v15 = vmul.f32 %v211_v13, %v211_v13  ;;  %v212_v17 = vld [vmem:[%s1125_s20 + $0x28] sm:$0xff]  ;;  %v1185_v20 = vld [vmem:[%s1125_s20 + $0x80] sm:$0xff]  ;;  %v213_v21 = vld [vmem:[%s1125_s20 + $0x30] sm:$0xff]  ;;  %v581_v47 = vsel %vm580_vm3, %v557_v45, 0.0  ;;  %v584_v51 = vsel %vm580_vm3, %v558_v49, 0.0 }
  0x16   : > { %588 = vadd.xlane.f32.xlu1 %v587_v10  ;;  %v590_v14 = vsel %vm580_vm3, %v560_v11, 0.0  ;;  %v562_v19 = vmul.f32 %v212_v17, %v212_v17  ;;  %v563_v23 = vmul.f32 %v213_v21, %v213_v21  ;;  %v1197_v24 = vld [vmem:[%s1125_s20 + $0x88] sm:$0xff]  ;;  %v214_v25 = vld [vmem:[%s1125_s20 + $0x38] sm:$0xff]  ;;  %v1209_v28 = vld [vmem:[%s1125_s20 + $0x90] sm:$0xff]  ;;  %582 = vadd.xlane.f32.xlu0 %v581_v47  ;;  %v617_v50 = vsel %vm580_vm3, %v569_v48, 0.0 }
  0x17   : > { %954 = vmatmul.mubr.msk.f32.gmra.mrb[2].mxu0 %vm231_vm2, %v1143_v6  ;;  %v593_v18 = vsel %vm580_vm3, %v561_v15, 0.0  ;;  %v564_v27 = vmul.f32 %v214_v25, %v214_v25  ;;  %v215_v29 = vld [vmem:[%s1125_s20 + $0x40] sm:$0xff]  ;;  %v1221_v32 = vld [vmem:[%s1125_s20 + $0x98] sm:$0xff]  ;;  %v216_v33 = vld [vmem:[%s1125_s20 + $0x48] sm:$0xff]  ;;  %v620_v59 = vsel %vm580_vm3, %v570_v54, 0.0  ;;  %v571_v60 = vmul.f32 %v1161_v12, %v1161_v12 }
  0x18   : > { %990 = vmatmul.mubr.msk.f32.gmra.mrb[2].mxu1 %vm231_vm2, %v1148_v7  ;;  %956 = vmatprep.mubr.msk.f32.mxu0 %vm1074_vm0, %v1073_v0  ;;  %v596_v22 = vsel %vm580_vm3, %v562_v19, 0.0  ;;  %v599_v26 = vsel %vm580_vm3, %v563_v23, 0.0  ;;  %v565_v31 = vmul.f32 %v215_v29, %v215_v29  ;;  %v566_v35 = vmul.f32 %v216_v33, %v216_v33  ;;  %v1233_v36 = vld [vmem:[%s1125_s20 + $0xa0] sm:$0xff]  ;;  %v217_v37 = vld [vmem:[%s1125_s20 + $0x50] sm:$0xff]  ;;  %v1245_v40 = vld [vmem:[%s1125_s20 + $0xa8] sm:$0xff] }
  0x19   : > { %992 = vmatprep.mubr.msk.f32.mxu1 %vm1074_vm0, %v1073_v0  ;;  %v602_v30 = vsel %vm580_vm3, %v564_v27, 0.0  ;;  %v567_v39 = vmul.f32 %v217_v37, %v217_v37  ;;  %v1256_v42 = vld [vmem:[%s1125_s20 + $0xb0] sm:$0xf]  ;;  %v218_v43 = vld [vmem:[%s1125_s20 + $0x58] sm:$0xff]  ;;  %v623_v1 = vsel %vm580_vm3, %v571_v60, 0.0  ;;  %v572_v2 = vmul.f32 %v1173_v16, %v1173_v16 }
  0x1a   : > { %591 = vadd.xlane.f32.xlu1 %v590_v14  ;;  %v605_v34 = vsel %vm580_vm3, %v565_v31, 0.0  ;;  %v608_v38 = vsel %vm580_vm3, %v566_v35, 0.0  ;;  %v568_v44 = vmul.f32 %v218_v43, %v218_v43  ;;  %585 = vadd.xlane.f32.xlu0 %v584_v51  ;;  %v573_v8 = vmul.f32 %v1185_v20, %v1185_v20  ;;  %v507_v49 = vld [vmem:[#allocation2 + $0xb0] sm:$0xf] }
  0x1b   : > { %957 = vmatmul.mubr.msk.f32.gmra.mrb[4].mxu0 %vm231_vm2, %v209_v5  ;;  %v611_v41 = vsel %vm580_vm3, %v567_v39, 0.0  ;;  %v626_v7 = vsel %vm580_vm3, %v572_v2, 0.0  ;;  %v574_v14 = vmul.f32 %v1197_v24, %v1197_v24 }
  0x1c   : > { %993 = vmatmul.mubr.msk.f32.gmra.mrb[4].mxu1 %vm231_vm2, %v1161_v12  ;;  %959 = vmatprep.mubr.msk.f32.mxu0 %vm1074_vm0, %v1073_v0  ;;  %v614_v46 = vsel %vm580_vm3, %v568_v44, 0.0 }
  0x1d   : > { %995 = vmatprep.mubr.msk.f32.mxu1 %vm1074_vm0, %v1073_v0  ;;  %v632_v19 = vsel %vm580_vm3, %v574_v14, 0.0 }
  0x1e   : > { %594 = vadd.xlane.f32.xlu1 %v593_v18 }
  0x1f   : > { %960 = vmatmul.mubr.msk.f32.gmra.mrb[6].mxu0 %vm231_vm2, %v210_v9 }
  0x20   : > { %996 = vmatmul.mubr.msk.f32.gmra.mrb[6].mxu1 %vm231_vm2, %v1173_v16  ;;  %962 = vmatprep.mubr.msk.f32.mxu0 %vm1074_vm0, %v1073_v0 }
  0x21   : > { %998 = vmatprep.mubr.msk.f32.mxu1 %vm1074_vm0, %v1073_v0 }
  0x22   : > { %597 = vadd.xlane.f32.xlu1 %v596_v22 }
  0x23   : > { %963 = vmatmul.mubr.msk.f32.gmra.mrb[8].mxu0 %vm231_vm2, %v211_v13  ;;  %v629_v13 = vsel %vm580_vm3, %v573_v8, 0.0 }
  0x24   : > { %999 = vmatmul.mubr.msk.f32.gmra.mrb[8].mxu1 %vm231_vm2, %v1185_v20  ;;  %965 = vmatprep.mubr.msk.f32.mxu0 %vm1074_vm0, %v1073_v0  ;;  %v575_v20 = vmul.f32 %v1209_v28, %v1209_v28 }
  0x25   : > { %1001 = vmatprep.mubr.msk.f32.mxu1 %vm1074_vm0, %v1073_v0 }
  0x26   : > { %600 = vadd.xlane.f32.xlu1 %v599_v26  ;;  %v635_v26 = vsel %vm580_vm3, %v575_v20, 0.0 }
  0x27   : > { %966 = vmatmul.mubr.msk.f32.gmra.mrb[10].mxu0 %vm231_vm2, %v212_v17 }
  0x28   : > { %1002 = vmatmul.mubr.msk.f32.gmra.mrb[10].mxu1 %vm231_vm2, %v1197_v24  ;;  %968 = vmatprep.mubr.msk.f32.mxu0 %vm1074_vm0, %v1073_v0  ;;  %v576_v24 = vmul.f32 %v1221_v32, %v1221_v32 }
  0x29   : > { %1004 = vmatprep.mubr.msk.f32.mxu1 %vm1074_vm0, %v1073_v0 }
  0x2a   : > { %603 = vadd.xlane.f32.xlu1 %v602_v30 }
  0x2b   : > { %969 = vmatmul.mubr.msk.f32.gmra.mrb[12].mxu0 %vm231_vm2, %v213_v21 }
  0x2c   : > { %1005 = vmatmul.mubr.msk.f32.gmra.mrb[12].mxu1 %vm231_vm2, %v1209_v28  ;;  %971 = vmatprep.mubr.msk.f32.mxu0 %vm1074_vm0, %v1073_v0  ;;  %v577_v28 = vmul.f32 %v1233_v36, %v1233_v36 }
  0x2d   : > { %1007 = vmatprep.mubr.msk.f32.mxu1 %vm1074_vm0, %v1073_v0 }
  0x2e   : > { %606 = vadd.xlane.f32.xlu1 %v605_v34  ;;  %v641_v39 = vsel %vm580_vm3, %v577_v28, 0.0 }
  0x2f   : > { %972 = vmatmul.mubr.msk.f32.gmra.mrb[14].mxu0 %vm231_vm2, %v214_v25 }
  0x30   : > { %1008 = vmatmul.mubr.msk.f32.gmra.mrb[14].mxu1 %vm231_vm2, %v1221_v32  ;;  %974 = vmatprep.mubr.msk.f32.mxu0 %vm1074_vm0, %v1073_v0  ;;  %v578_v32 = vmul.f32 %v1245_v40, %v1245_v40 }
  0x31   : > { %1010 = vmatprep.mubr.msk.f32.mxu1 %vm1074_vm0, %v1073_v0 }
  0x32   : > { %609 = vadd.xlane.f32.xlu1 %v608_v38 }
  0x33   : > { %975 = vmatmul.mubr.msk.f32.gmra.mrb[16].mxu0 %vm231_vm2, %v215_v29 }
  0x34   : > { %1011 = vmatmul.mubr.msk.f32.gmra.mrb[16].mxu1 %vm231_vm2, %v1233_v36  ;;  %977 = vmatprep.mubr.msk.f32.mxu0 %vm1074_vm0, %v1073_v0  ;;  %v579_v36 = vmul.f32 %v1256_v42, %v1256_v42 }
  0x35   : > { %1013 = vmatprep.mubr.msk.f32.mxu1 %vm1074_vm0, %v1073_v0 }
  0x36   : > { %612 = vadd.xlane.f32.xlu1 %v611_v41 }
  0x37   : > { %978 = vmatmul.mubr.msk.f32.gmra.mrb[18].mxu0 %vm231_vm2, %v216_v33  ;;  %v638_v33 = vsel %vm580_vm3, %v576_v24, 0.0 }
  0x38   : > { %1014 = vmatmul.mubr.msk.f32.gmra.mrb[18].mxu1 %vm231_vm2, %v1245_v40  ;;  %980 = vmatprep.mubr.msk.f32.mxu0 %vm1074_vm0, %v1073_v0  ;;  %v648_v40 = vsel %vm647_vm4, %v579_v36, 0.0 }
  0x39   : > { %1016 = vmatprep.mubr.msk.f32.mxu1 %vm1074_vm0, %v1073_v0 }
  0x3a   : > { %615 = vadd.xlane.f32.xlu1 %v614_v46  ;;  %v644_v46 = vsel %vm580_vm3, %v578_v32, 0.0 }
  0x3b   : > { %981 = vmatmul.mubr.msk.f32.gmra.mrb[20].mxu0 %vm231_vm2, %v217_v37 }
  0x3c   : > { %1017 = vmatmul.mubr.msk.f32.gmra.mrb[20].mxu1 %vm231_vm2, %v1256_v42  ;;  %983 = vmatprep.mubr.msk.f32.mxu0 %vm1074_vm0, %v1073_v0 }
  0x3e   : > { %618 = vadd.xlane.f32.xlu1 %v617_v50 }
  0x3f   : > { %984 = vmatmul.mubr.msk.f32.gmra.mrb[22].mxu0 %vm231_vm2, %v218_v43 }
  0xe6   : > { %v371_v52 = vpop.f32.mrb[0].mxu0 }
  0xe7   : > { %v431_v53 = vpop.f32.mrb[0].mxu1  ;;  %v952_v55 = vpop.f32.mrb[1].mxu0  ;;  %697 = vmin.xlane.f32.xlu1 %v371_v52 }
  0xe8   : > { %v988_v56 = vpop.f32.mrb[1].mxu1  ;;  %721 = vmin.xlane.f32.xlu0 %v431_v53 }
  0xea   : > { %v376_v57 = vpop.f32.mrb[2].mxu0 }
  0xeb   : > { %v436_v58 = vpop.f32.mrb[2].mxu1  ;;  %v955_v61 = vpop.f32.mrb[3].mxu0  ;;  %621 = vadd.xlane.f32.xlu1 %v620_v59 }
  0xec   : > { %v991_v62 = vpop.f32.mrb[3].mxu1  ;;  %699 = vmin.xlane.f32.xlu0 %v376_v57 }
  0xee   : > { %v381_v63 = vpop.f32.mrb[4].mxu0 }
  0xef   : > { %v441_v0 = vpop.f32.mrb[4].mxu1  ;;  %v958_v3 = vpop.f32.mrb[5].mxu0  ;;  %624 = vadd.xlane.f32.xlu1 %v623_v1 }
  0xf0   : > { %v994_v4 = vpop.f32.mrb[5].mxu1  ;;  %723 = vmin.xlane.f32.xlu0 %v436_v58  ;;  %v589_v58 = vpop.xlane.xlu1 %588 }
  0xf2   : > { %v386_v5 = vpop.f32.mrb[6].mxu0 }
  0xf3   : > { %v446_v6 = vpop.f32.mrb[6].mxu1  ;;  %v961_v9 = vpop.f32.mrb[7].mxu0  ;;  %627 = vadd.xlane.f32.xlu1 %v626_v7 }
  0xf4   : > { %v997_v10 = vpop.f32.mrb[7].mxu1  ;;  %701 = vmin.xlane.f32.xlu0 %v381_v63  ;;  %v592_v59 = vpop.xlane.xlu1 %591 }
  0xf5   : > { %v654_v24 = vmul.f32 0.25, %v592_v59 }
  0xf6   : > { %v391_v11 = vpop.f32.mrb[8].mxu0 }
  0xf7   : > { %v451_v12 = vpop.f32.mrb[8].mxu1  ;;  %v964_v15 = vpop.f32.mrb[9].mxu0  ;;  %630 = vadd.xlane.f32.xlu1 %v629_v13 }
  0xf8   : > { %v1000_v16 = vpop.f32.mrb[9].mxu1  ;;  %725 = vmin.xlane.f32.xlu0 %v441_v0  ;;  %v595_v60 = vpop.xlane.xlu1 %594 }
  0xf9   : > { %v583_v0 = vpop.xlane.xlu0 %582 }
  0xfa   : > { %v396_v17 = vpop.f32.mrb[10].mxu0 }
  0xfb   : > { %v456_v18 = vpop.f32.mrb[10].mxu1  ;;  %v967_v21 = vpop.f32.mrb[11].mxu0  ;;  %633 = vadd.xlane.f32.xlu1 %v632_v19 }
  0xfc   : > { %v1003_v22 = vpop.f32.mrb[11].mxu1  ;;  %703 = vmin.xlane.f32.xlu0 %v386_v5  ;;  %v598_v61 = vpop.xlane.xlu1 %597 }
  0xfd   : > { %v586_v2 = vpop.xlane.xlu0 %585 }
  0xfe   : > { %v401_v23 = vpop.f32.mrb[12].mxu0  ;;  %v652_v20 = vmul.f32 0.25, %v586_v2 }
  0xff   : > { %v461_v25 = vpop.f32.mrb[12].mxu1  ;;  %v970_v27 = vpop.f32.mrb[13].mxu0  ;;  %636 = vadd.xlane.f32.xlu1 %v635_v26 }
 0x100   : > { %v1006_v29 = vpop.f32.mrb[13].mxu1  ;;  %727 = vmin.xlane.f32.xlu0 %v446_v6  ;;  %v601_v62 = vpop.xlane.xlu1 %600 }
 0x102   : > { %v406_v30 = vpop.f32.mrb[14].mxu0 }
 0x103   : > { %v466_v31 = vpop.f32.mrb[14].mxu1  ;;  %v973_v34 = vpop.f32.mrb[15].mxu0  ;;  %639 = vadd.xlane.f32.xlu1 %v638_v33  ;;  %v655_v33 = vmul.f32 0.25, %v595_v60 }
 0x104   : > { %v1009_v35 = vpop.f32.mrb[15].mxu1  ;;  %705 = vmin.xlane.f32.xlu0 %v391_v11  ;;  %v604_v63 = vpop.xlane.xlu1 %603 }
 0x105   : > { %v656_v35 = vmul.f32 0.25, %v598_v61  ;;  %v658_v36 = vmul.f32 0.25, %v604_v63 }
 0x106   : > { %v411_v37 = vpop.f32.mrb[16].mxu0 }
 0x107   : > { %v471_v38 = vpop.f32.mrb[16].mxu1  ;;  %v976_v41 = vpop.f32.mrb[17].mxu0  ;;  %642 = vadd.xlane.f32.xlu1 %v641_v39 }
 0x108   : > { %v1012_v43 = vpop.f32.mrb[17].mxu1  ;;  %729 = vmin.xlane.f32.xlu0 %v451_v12  ;;  %v607_v1 = vpop.xlane.xlu1 %606  ;;  %v657_v41 = vmul.f32 0.25, %v601_v62 }
 0x10a   : > { %v416_v44 = vpop.f32.mrb[18].mxu0 }
 0x10b   : > { %v476_v45 = vpop.f32.mrb[18].mxu1  ;;  %v979_v47 = vpop.f32.mrb[19].mxu0  ;;  %645 = vadd.xlane.f32.xlu1 %v644_v46 }
 0x10c   : > { %v1015_v48 = vpop.f32.mrb[19].mxu1  ;;  %707 = vmin.xlane.f32.xlu0 %v396_v17  ;;  %v610_v3 = vpop.xlane.xlu1 %609 }
 0x10e   : > { %v421_v50 = vpop.f32.mrb[20].mxu0 }
 0x10f   : > { %v481_v51 = vpop.f32.mrb[20].mxu1  ;;  %v982_v52 = vpop.f32.mrb[21].mxu0  ;;  %649 = vadd.xlane.f32.xlu1 %v648_v40 }
 0x110   : > { %v530_v53 = vmin.f32 %v507_v49, %v481_v51  ;;  %v1018_v54 = vpop.f32.mrb[21].mxu1  ;;  %709 = vmin.xlane.f32.xlu0 %v401_v23  ;;  %v613_v5 = vpop.xlane.xlu1 %612  ;;  %v653_v23 = vmul.f32 0.25, %v589_v58  ;;  %v659_v51 = vmul.f32 0.25, %v607_v1 }
 0x111   : > { %v660_v54 = vmul.f32 0.25, %v610_v3  ;;  %v661_v62 = vmul.f32 0.25, %v613_v5 }
 0x112   : > { %553 = vst [vmem:[#allocation2 + $0xb0] sm:$0xf] %v530_v53  ;;  %v426_v55 = vpop.f32.mrb[22].mxu0 }
 0x113   : > { %v985_v56 = vpop.f32.mrb[23].mxu0 }
 0x114   : > { %711 = vmin.xlane.f32.xlu0 %v406_v30  ;;  %v1307_v7 = vpop.xlane.xlu1 %615 }
 0x118   : > { %713 = vmin.xlane.f32.xlu0 %v411_v37  ;;  %v619_v10 = vpop.xlane.xlu1 %618 }
 0x119   : > { %v696_v57 = vld [vmem:[#allocation2 + $0xb0] sm:$0xf] }
 0x11a   : > { %v741_v42 = vsel %vm301_vm1, %v696_v57, inf }
 0x11b   : > { %742 = vmin.xlane.f32.xlu1 %v741_v42 }
 0x11c   : > { %715 = vmin.xlane.f32.xlu0 %v416_v44 }
 0x120   : > { %717 = vmin.xlane.f32.xlu0 %v421_v50 }
 0x124   : > { %719 = vmin.xlane.f32.xlu0 %v426_v55 }
 0x128   : > { %731 = vmin.xlane.f32.xlu0 %v456_v18 }
 0x12c   : > { %733 = vmin.xlane.f32.xlu0 %v461_v25  ;;  %v651_v25 = vmul.f32 0.25, %v583_v0 }
 0x130   : > { %735 = vmin.xlane.f32.xlu0 %v466_v31 }
 0x134   : > { %737 = vmin.xlane.f32.xlu0 %v471_v38 }
 0x138   : > { %739 = vmin.xlane.f32.xlu0 %v476_v45 }
 0x174   : > { %v698_v12 = vpop.xlane.xlu1 %697 }
 0x175   : > { %v1305_v4 = vpop.xlane.xlu0 %721  ;;  %v744_v27 = vadd.f32 %v698_v12, %v651_v25 }
 0x177   : > { %v767_v37 = vmax.f32 %v744_v27, 0.0 }
 0x178   : > { %v622_v14 = vpop.xlane.xlu1 %621 }
 0x179   : > { %v700_v6 = vpop.xlane.xlu0 %699  ;;  %v664_v3 = vmul.f32 0.25, %v622_v14 }
 0x17a   : > { %v745_v26 = vadd.f32 %v700_v6, %v652_v20  ;;  %v663_v6 = vmul.f32 0.25, %v619_v10 }
 0x17c   : > { %v625_v16 = vpop.xlane.xlu1 %624  ;;  %v768_v28 = vmax.f32 %v745_v26, 0.0  ;;  %v756_v25 = vadd.f32 %v1305_v4, %v663_v6 }
 0x17d   : > { %v1309_v8 = vpop.xlane.xlu0 %723  ;;  %v665_v26 = vmul.f32 0.25, %v625_v16 }
 0x17e   : > { %v790_v43 = vadd.f32 %v768_v28, %v767_v37  ;;  %v757_v5 = vadd.f32 %v1309_v8, %v664_v3 }
 0x180   : > { %v1315_v18 = vpop.xlane.xlu1 %627  ;;  %v780_v37 = vmax.f32 %v757_v5, 0.0 }
 0x181   : > { %v702_v9 = vpop.xlane.xlu0 %701 }
 0x182   : > { %v746_v29 = vadd.f32 %v702_v9, %v653_v23 }
 0x184   : > { %v1319_v21 = vpop.xlane.xlu1 %630  ;;  %v769_v38 = vmax.f32 %v746_v29, 0.0  ;;  %v666_v29 = vmul.f32 0.25, %v1315_v18 }
 0x185   : > { %v1311_v11 = vpop.xlane.xlu0 %725  ;;  %v667_v14 = vmul.f32 0.25, %v1319_v21 }
 0x186   : > { %v791_v47 = vadd.f32 %v790_v43, %v769_v38 }
 0x188   : > { %v1321_v30 = vpop.xlane.xlu1 %633 }
 0x189   : > { %v704_v13 = vpop.xlane.xlu0 %703  ;;  %v668_v18 = vmul.f32 0.25, %v1321_v30 }
 0x18a   : > { %v747_v34 = vadd.f32 %v704_v13, %v654_v24 }
 0x18c   : > { %v770_v44 = vmax.f32 %v747_v34, 0.0  ;;  %v637_v46 = vpop.xlane.xlu1 %636  ;;  %v779_v34 = vmax.f32 %v756_v25, 0.0 }
 0x18d   : > { %v1313_v15 = vpop.xlane.xlu0 %727 }
 0x18e   : > { %v792_v40 = vadd.f32 %v791_v47, %v770_v44  ;;  %v759_v4 = vadd.f32 %v1313_v15, %v666_v29  ;;  %v669_v44 = vmul.f32 0.25, %v637_v46 }
 0x190   : > { %v640_v42 = vpop.xlane.xlu1 %639  ;;  %v782_v43 = vmax.f32 %v759_v4, 0.0 }
 0x191   : > { %v706_v17 = vpop.xlane.xlu0 %705  ;;  %v670_v21 = vmul.f32 0.25, %v640_v42 }
 0x192   : > { %v748_v39 = vadd.f32 %v706_v17, %v655_v33  ;;  %v662_v17 = vmul.f32 0.25, %v1307_v7  ;;  %v758_v7 = vadd.f32 %v1311_v11, %v665_v26 }
 0x194   : > { %v771_v48 = vmax.f32 %v748_v39, 0.0  ;;  %v643_v13 = vpop.xlane.xlu1 %642  ;;  %v781_v39 = vmax.f32 %v758_v7, 0.0 }
 0x195   : > { %v1317_v19 = vpop.xlane.xlu0 %729 }
 0x196   : > { %v793_v55 = vadd.f32 %v792_v40, %v771_v48  ;;  %v760_v8 = vadd.f32 %v1317_v19, %v667_v14  ;;  %v671_v40 = vmul.f32 0.25, %v643_v13 }
 0x198   : > { %v646_v33 = vpop.xlane.xlu1 %645  ;;  %v783_v47 = vmax.f32 %v760_v8, 0.0 }
 0x199   : > { %v708_v22 = vpop.xlane.xlu0 %707  ;;  %v672_v46 = vmul.f32 0.25, %v646_v33 }
 0x19a   : > { %v749_v45 = vadd.f32 %v708_v22, %v656_v35 }
 0x19c   : > { %v772_v52 = vmax.f32 %v749_v45, 0.0 }
 0x19d   : > { %v710_v31 = vpop.xlane.xlu0 %709 }
 0x19e   : > { %v750_v49 = vadd.f32 %v710_v31, %v657_v41  ;;  %v794_v59 = vadd.f32 %v793_v55, %v772_v52  ;;  %v650_v41 = vpop.xlane.xlu1 %649 }
 0x1a0   : > { %v773_v56 = vmax.f32 %v750_v49, 0.0 }
 0x1a1   : > { %v712_v32 = vpop.xlane.xlu0 %711 }
 0x1a2   : > { %v751_v53 = vadd.f32 %v712_v32, %v658_v36  ;;  %v795_v0 = vadd.f32 %v794_v59, %v773_v56 }
 0x1a4   : > { %v774_v60 = vmax.f32 %v751_v53, 0.0 }
 0x1a5   : > { %v714_v50 = vpop.xlane.xlu0 %713 }
 0x1a6   : > { %v752_v57 = vadd.f32 %v714_v50, %v659_v51  ;;  %v796_v9 = vadd.f32 %v795_v0, %v774_v60  ;;  %v673_v50 = vmul.f32 0.25, %v650_v41 }
 0x1a8   : > { %v775_v63 = vmax.f32 %v752_v57, 0.0  ;;  %v743_v53 = vpop.xlane.xlu1 %742 }
 0x1a9   : > { %v716_v58 = vpop.xlane.xlu0 %715  ;;  %v766_v56 = vadd.f32 %v743_v53, %v673_v50 }
 0x1aa   : > { %v753_v61 = vadd.f32 %v716_v58, %v660_v54  ;;  %v797_v20 = vadd.f32 %v796_v9, %v775_v63 }
 0x1ac   : > { %v776_v12 = vmax.f32 %v753_v61, 0.0 }
 0x1ad   : > { %v718_v2 = vpop.xlane.xlu0 %717 }
 0x1ae   : > { %v754_v1 = vadd.f32 %v718_v2, %v661_v62  ;;  %v798_v24 = vadd.f32 %v797_v20, %v776_v12  ;;  %v789_v62 = vmax.f32 %v766_v56, 0.0 }
 0x1b0   : > { %v777_v22 = vmax.f32 %v754_v1, 0.0  ;;  %v811_v6 = vsel %vm301_vm1, %v789_v62, 0.0 }
 0x1b1   : > { %v720_v23 = vpop.xlane.xlu0 %719 }
 0x1b2   : > { %v755_v27 = vadd.f32 %v720_v23, %v662_v17  ;;  %v799_v10 = vadd.f32 %v798_v24, %v777_v22 }
 0x1b4   : > { %v778_v31 = vmax.f32 %v755_v27, 0.0 }
 0x1b5   : > { %v732_v28 = vpop.xlane.xlu0 %731 }
 0x1b6   : > { %v800_v35 = vadd.f32 %v799_v10, %v778_v31  ;;  %v761_v36 = vadd.f32 %v732_v28, %v668_v18 }
 0x1b8   : > { %v801_v16 = vadd.f32 %v800_v35, %v779_v34  ;;  %v784_v51 = vmax.f32 %v761_v36, 0.0 }
 0x1b9   : > { %v734_v38 = vpop.xlane.xlu0 %733 }
 0x1ba   : > { %v802_v32 = vadd.f32 %v801_v16, %v780_v37  ;;  %v762_v49 = vadd.f32 %v734_v38, %v669_v44 }
 0x1bc   : > { %v803_v45 = vadd.f32 %v802_v32, %v781_v39  ;;  %v785_v30 = vmax.f32 %v762_v49, 0.0 }
 0x1bd   : > { %v736_v11 = vpop.xlane.xlu0 %735 }
 0x1be   : > { %v804_v48 = vadd.f32 %v803_v45, %v782_v43  ;;  %v763_v52 = vadd.f32 %v736_v11, %v670_v21 }
 0x1c0   : > { %v805_v15 = vadd.f32 %v804_v48, %v783_v47  ;;  %v786_v58 = vmax.f32 %v763_v52, 0.0 }
 0x1c1   : > { %v738_v19 = vpop.xlane.xlu0 %737 }
 0x1c2   : > { %v806_v54 = vadd.f32 %v805_v15, %v784_v51  ;;  %v764_v55 = vadd.f32 %v738_v19, %v671_v40 }
 0x1c4   : > { %v807_v57 = vadd.f32 %v806_v54, %v785_v30  ;;  %v787_v42 = vmax.f32 %v764_v55, 0.0 }
 0x1c5   : > { %v740_v59 = vpop.xlane.xlu0 %739 }
 0x1c6   : > { %v808_v60 = vadd.f32 %v807_v57, %v786_v58  ;;  %v765_v61 = vadd.f32 %v740_v59, %v672_v46 }
 0x1c8   : > { %v809_v0 = vadd.f32 %v808_v60, %v787_v42  ;;  %v788_v63 = vmax.f32 %v765_v61, 0.0 }
 0x1ca   : > { %v810_v2 = vadd.f32 %v809_v0, %v788_v63 }
 0x1cc   : > { %v812_v9 = vadd.f32 %v811_v6, %v810_v2 }
 0x1ce   : > { %v813_v12 = vrot.slane %v812_v9, 4 }
 0x1d0   : > { %v814_v1 = vadd.f32 %v813_v12, %v812_v9 }
 0x1d2   : > { %v815_v13 = vrot.slane %v814_v1, 2 }
 0x1d4   : > { %v816_v17 = vadd.f32 %v815_v13, %v814_v1 }
 0x1d6   : > { %v817_v3 = vrot.slane %v816_v17, 1 }
 0x1d8   : > { %v818_v20 = vadd.f32 %v817_v3, %v816_v17 }
 0x1da   : > { %820 = vst.msk [vmem:[%s179_s23] sm:$0x1] %vm819_vm5, %v818_v20 }
 0x1db PF: > { %s12_s11 = sadd.s32 1, %s1071_s11   ;;  %s1349_s9 = smov %s1067_s10 }
 0x1dc   : > { %p9_p5 = scmp.ge.s32.totalorder %s12_s11, 4   ;;  %s1350_s10 = smov %s1352_s12 }
 0x1de   :  { %11 = sbr.rel (!%p9_p5) target bundleno = 2 (0x2), region = 69 }

</bundles_post_ra>
